<compile_context>
chip_gen: v7x
topology: tpu7x:2x2x1
jax: 0.10.0
libtpu: 0.0.40
codegen_flags: <defaults>
</compile_context>

<pallas_src>
import functools
import math

import jax
import jax.numpy as jnp
from jax.experimental import pallas as pl
from jax.experimental.pallas import tpu as pltpu


LANE = 128
SUBLANE = 8
BB_MAX = 512          # >=512-row tiles reach ~85%+ of HBM roofline (measured, v6e)


def _round_up(x, m):
    return ((x + m - 1) // m) * m


def _bias_layout(use_projection, Hp, Pp, H2p, H4p):
    """Static lane layout of the packed bias row (shared by wrapper and kernel)."""
    offs, o = {}, 0
    if use_projection:
        offs["bp"] = o
        o += Pp
    offs["b1u1"] = o
    o += Hp + H4p
    offs["b2"] = o
    o += Pp
    offs["be1"] = o
    o += H2p
    offs["be2"] = o
    o += Hp
    offs["bu2"] = o
    o += LANE
    return offs, o


# ----------------------------------------------------------------------------- #
# Kernel
# ----------------------------------------------------------------------------- #
def _pc_kernel(*refs, use_projection, boffs):
    if use_projection:
        (x_ref, h_ref, wp_ref, w1u1_ref, w2_ref, we1_ref, we2_ref,
         wu2_ref, bias_ref, pred_ref, esig_ref, unc_ref) = refs
    else:
        (x_ref, h_ref, w1u1_ref, w2_ref, we1_ref, we2_ref,
         wu2_ref, bias_ref, pred_ref, esig_ref, unc_ref) = refs

    Hp = w1u1_ref.shape[0]
    H4p = w1u1_ref.shape[1] - Hp
    Pp = w2_ref.shape[1]
    H2p = we1_ref.shape[1]

    def bseg(name, n):                      # static, lane-aligned slice of bias pack
        o = boffs[name]
        return bias_ref[:, o:o + n]         # (1, n) f32

    h_bf = h_ref[...]                       # bf16 (pre-cast in the wrapper)

    # ---- fused first layers of prediction_net (tanh) and uncertainty_net (relu),
    #      both fed by h: one MXU launch instead of two --------------------------
    hu = (jnp.dot(h_bf, w1u1_ref[...], preferred_element_type=jnp.float32)
          + bseg("b1u1", Hp + H4p))         # (BB, Hp+H4p) f32
    ph = jnp.tanh(hu[:, :Hp])
    uh = jnp.maximum(hu[:, Hp:], 0.0)

    # ---- prediction_net layer 2 ------------------------------------------------
    prediction = (jnp.dot(ph.astype(jnp.bfloat16), w2_ref[...],
                          preferred_element_type=jnp.float32)
                  + bseg("b2", Pp))

    # ---- input projection (Linear or Identity) ---------------------------------
    if use_projection:
        proj = (jnp.dot(x_ref[...], wp_ref[...],          # x already bf16
                        preferred_element_type=jnp.float32)
                + bseg("bp", Pp))
    else:
        proj = x_ref[...]                                  # f32, Ip == Pp

    # ---- error_net(proj - prediction): Linear -> ReLU -> Linear ----------------
    # The cancellation-prone subtraction happens in f32; only the residual is
    # rounded to bf16 for the MXU (keeps well inside the 5e-2 tolerance).
    perr = proj - prediction
    eh = jnp.maximum(
        jnp.dot(perr.astype(jnp.bfloat16), we1_ref[...],
                preferred_element_type=jnp.float32) + bseg("be1", H2p),
        0.0)
    error_signal = (jnp.dot(eh.astype(jnp.bfloat16), we2_ref[...],
                            preferred_element_type=jnp.float32)
                    + bseg("be2", Hp))

    # ---- uncertainty_net layer 2 + softplus -------------------------------------
    # Only output column 0 is real, so replace the (BB,H4p)@(H4p,128) MXU dot with
    # a VPU broadcast-multiply (f32 wu2 row) + XLU lane reduction (slots with slack).
    ul = (jnp.sum(uh * wu2_ref[...], axis=-1, keepdims=True)
          + bias_ref[:, boffs["bu2"]:boffs["bu2"] + 1])    # (BB, 1) f32
    # Numerically-stable softplus.  (log1p would only matter where exp(-|x|)<1e-7,
    # i.e. where the term itself is <1e-7 absolute — negligible at f32.)
    uncertainty = jnp.maximum(ul, 0.0) + jnp.log(1.0 + jnp.exp(-jnp.abs(ul)))

    pred_ref[...] = prediction.astype(pred_ref.dtype)
    esig_ref[...] = error_signal.astype(esig_ref.dtype)
    # Lane-dense (unmasked) store; wrapper slices column 0.
    unc_ref[...] = jnp.broadcast_to(uncertainty, unc_ref.shape).astype(unc_ref.dtype)


# ----------------------------------------------------------------------------- #
# One-time weight preparation (hoisted out of the per-timestep call)
# ----------------------------------------------------------------------------- #
def _pad2(w, rows, cols, dtype):
    w = jnp.asarray(w, jnp.float32)
    w = jnp.pad(w, ((0, rows - w.shape[0]), (0, cols - w.shape[1])))
    return w.astype(dtype)


def _pad_row(b, cols):
    b = jnp.asarray(b, jnp.float32).reshape(1, -1)
    return jnp.pad(b, ((0, 0), (0, cols - b.shape[1])))


def prepare_params(params):
    """Pad/cast/fuse/pack the layer weights once; reuse across timesteps."""
    H = params["w1"].shape[0]
    P = params["w2"].shape[1]
    H2 = params["we1"].shape[1]
    H4 = params["wu1"].shape[1]
    use_projection = "wp" in params            # mirrors `input_size != prediction_size`
    I = params["wp"].shape[0] if use_projection else P

    Ip, Hp, Pp = _round_up(I, LANE), _round_up(H, LANE), _round_up(P, LANE)
    H2p, H4p = _round_up(H2, LANE), _round_up(H4, LANE)

    # Packed bias row, laid out exactly as _bias_layout describes.
    segs = []
    if use_projection:
        segs.append(_pad_row(params["bp"], Pp))
    segs.append(jnp.concatenate([_pad_row(params["b1"], Hp),
                                 _pad_row(params["bu1"], H4p)], axis=1))
    segs.append(_pad_row(params["b2"], Pp))
    segs.append(_pad_row(params["be1"], H2p))
    segs.append(_pad_row(params["be2"], Hp))
    segs.append(_pad_row(params["bu2"], LANE))
    bias = jnp.concatenate(segs, axis=1)

    prepared = {
        "wp": _pad2(params["wp"], Ip, Pp, jnp.bfloat16) if use_projection else None,
        # prediction_net L1 and uncertainty_net L1 fused along the output axis.
        "w1u1": jnp.concatenate([_pad2(params["w1"], Hp, Hp, jnp.bfloat16),
                                 _pad2(params["wu1"], Hp, H4p, jnp.bfloat16)], axis=1),
        "w2": _pad2(params["w2"], Hp, Pp, jnp.bfloat16),
        "we1": _pad2(params["we1"], Pp, H2p, jnp.bfloat16),
        "we2": _pad2(params["we2"], H2p, Hp, jnp.bfloat16),
        # uncertainty L2 kept as an f32 row (consumed by VPU, not MXU).
        "wu2_row": _pad_row(params["wu2"].reshape(-1), H4p),
        "bias": bias,
    }
    dims = (I, H, P)                            # true sizes, static per config
    return prepared, dims


# ----------------------------------------------------------------------------- #
# Per-step fused forward
# ----------------------------------------------------------------------------- #
@functools.partial(jax.jit, static_argnums=(3,))
def predictive_coding_layer(input_data, hidden_state, prepared, dims):
    """Returns (prediction [B,P], error_signal [B,H], uncertainty [B,1])."""
    I, H, P = dims
    B = input_data.shape[0]
    use_projection = prepared["wp"] is not None

    w1u1 = prepared["w1u1"]
    Hp = w1u1.shape[0]
    H4p = w1u1.shape[1] - Hp
    Pp = prepared["w2"].shape[1]
    H2p = prepared["we1"].shape[1]
    Ip = prepared["wp"].shape[0] if use_projection else Pp

    boffs, bias_total = _bias_layout(use_projection, Hp, Pp, H2p, H4p)
    assert prepared["bias"].shape == (1, bias_total)

    # ---- batch blocking: large tiles, divisor-aware padding --------------------
    n_blocks = max(1, -(-B // BB_MAX))
    if n_blocks == 1:
        BB = _round_up(B, SUBLANE)              # single block == whole padded batch
    else:
        BB = _round_up(-(-B // n_blocks), 16)   # 16: bf16-native sublane tile
    Bp = _round_up(B, BB)
    grid = (Bp // BB,)

    # Activation streams enter the kernel already in bf16 (halves DMA bytes, no
    # in-kernel cast).  On the identity path x stays f32: it feeds the f32 subtract.
    x_dtype = jnp.bfloat16 if use_projection else jnp.float32
    xp = jnp.pad(input_data.astype(x_dtype), ((0, Bp - B), (0, Ip - I)))
    hp = jnp.pad(hidden_state.astype(jnp.bfloat16), ((0, Bp - B), (0, Hp - H)))

    out_dtype = jnp.float32
    const = lambda b: (0, 0)                    # grid-invariant weights / biases
    batch = lambda b: (b, 0)                    # activation / output batch blocks

    operands = [xp, hp]
    in_specs = [pl.BlockSpec((BB, Ip), batch),
                pl.BlockSpec((BB, Hp), batch)]
    if use_projection:
        operands.append(prepared["wp"])
        in_specs.append(pl.BlockSpec((Ip, Pp), const))
    operands += [prepared["w1u1"], prepared["w2"], prepared["we1"],
                 prepared["we2"], prepared["wu2_row"], prepared["bias"]]
    in_specs += [
        pl.BlockSpec((Hp, Hp + H4p), const),
        pl.BlockSpec((Hp, Pp), const),
        pl.BlockSpec((Pp, H2p), const),
        pl.BlockSpec((H2p, Hp), const),
        pl.BlockSpec((1, H4p), const),
        pl.BlockSpec((1, bias_total), const),
    ]

    # VMEM budget from the actual padded shapes (auto-pipeline double-buffers every
    # block, including the grid-invariant weights), capped below v7x's 64 MiB.
    # TODO(synk): single-buffer the grid-invariant weights (pipeline_mode=pl.Buffered(1))
    # when H grows large enough for double-buffered weights to pressure v7x VMEM.
    weight_bytes = sum(int(op.size) * op.dtype.itemsize for op in operands[2:])
    act_bytes = BB * (Ip * xp.dtype.itemsize + Hp * 2)
    out_bytes = BB * (Pp + Hp + LANE) * jnp.dtype(out_dtype).itemsize
    vmem_limit = int(min(max(2 * (weight_bytes + act_bytes + out_bytes) + (2 << 20),
                             16 << 20), 48 << 20))

    pred_p, esig_p, unc_p = pl.pallas_call(
        functools.partial(_pc_kernel, use_projection=use_projection, boffs=boffs),
        out_shape=(
            jax.ShapeDtypeStruct((Bp, Pp), out_dtype),
            jax.ShapeDtypeStruct((Bp, Hp), out_dtype),
            jax.ShapeDtypeStruct((Bp, LANE), out_dtype),
        ),
        grid_spec=pltpu.PrefetchScalarGridSpec(
            num_scalar_prefetch=0,
            grid=grid,
            in_specs=in_specs,
            out_specs=[
                pl.BlockSpec((BB, Pp), batch),
                pl.BlockSpec((BB, Hp), batch),
                pl.BlockSpec((BB, LANE), batch),
            ],
        ),
        compiler_params=pltpu.CompilerParams(
            dimension_semantics=("parallel",),   # batch-block axis is independent
            vmem_limit_bytes=vmem_limit,
        ),
    )(*operands)

    prediction = pred_p[:B, :P]
    error_signal = esig_p[:B, :H]
    uncertainty = unc_p[:B, :1]
    return prediction, error_signal, uncertainty


# ----------------------------------------------------------------------------- #
# Pure-JAX reference, init, and self-test
# ----------------------------------------------------------------------------- #
def reference_forward(input_data, hidden_state, params):
    """Pure-JAX f32 reference mirroring the PyTorch forward."""
    x = input_data.astype(jnp.float32)
    h = hidden_state.astype(jnp.float32)
    proj = x @ params["wp"] + params["bp"] if "wp" in params else x
    ph = jnp.tanh(h @ params["w1"] + params["b1"])
    prediction = ph @ params["w2"] + params["b2"]
    perr = proj - prediction
    eh = jnp.maximum(perr @ params["we1"] + params["be1"], 0.0)
    error_signal = eh @ params["we2"] + params["be2"]
    uh = jnp.maximum(h @ params["wu1"] + params["bu1"], 0.0)
    ul = uh @ params["wu2"] + params["bu2"]
    uncertainty = jnp.maximum(ul, 0.0) + jnp.log1p(jnp.exp(-jnp.abs(ul)))
    return prediction, error_signal, uncertainty


def _linear_init(key, fan_in, fan_out):
    # nn.Linear default: U(-1/sqrt(fan_in), +1/sqrt(fan_in)) for weight and bias.
    kw, kb = jax.random.split(key)
    bound = 1.0 / math.sqrt(fan_in)
    w = jax.random.uniform(kw, (fan_in, fan_out), jnp.float32, -bound, bound)
    b = jax.random.uniform(kb, (fan_out,), jnp.float32, -bound, bound)
    return w, b


def init_params(key, input_size, hidden_size, prediction_size):
    keys = jax.random.split(key, 7)
    p = {}
    p["w1"], p["b1"] = _linear_init(keys[0], hidden_size, hidden_size)
    p["w2"], p["b2"] = _linear_init(keys[1], hidden_size, prediction_size)
    p["we1"], p["be1"] = _linear_init(keys[2], prediction_size, hidden_size // 2)
    p["we2"], p["be2"] = _linear_init(keys[3], hidden_size // 2, hidden_size)
    p["wu1"], p["bu1"] = _linear_init(keys[4], hidden_size, hidden_size // 4)
    p["wu2"], p["bu2"] = _linear_init(keys[5], hidden_size // 4, 1)
    if input_size != prediction_size:
        p["wp"], p["bp"] = _linear_init(keys[6], input_size, prediction_size)
    return p


def _check(got, ref, name, atol=5e-2, rtol=5e-2):
    # bf16 MXU operands vs an f32 reference -> ~1e-2-level absolute differences.
    assert got.shape == ref.shape, f"{name}: shape {got.shape} vs {ref.shape}"
    assert jnp.allclose(got, ref, atol=atol, rtol=rtol), f"mismatch in {name}"


if __name__ == "__main__":
    # Small shapes consistent with the module: batch=4, input=24, hidden=32, pred=16.
    B, INPUT, HIDDEN, PRED = 4, 24, 32, 16

    key = jax.random.PRNGKey(0)
    kp, kx, kh = jax.random.split(key, 3)

    # --- path 1: input_size != prediction_size (Linear input projection) --------
    params = init_params(kp, INPUT, HIDDEN, PRED)
    prepared, dims = prepare_params(params)          # one-time weight prep (hoisted)
    x = jax.random.normal(kx, (B, INPUT), jnp.float32)
    h = jax.random.normal(kh, (B, HIDDEN), jnp.float32)

    pred, esig, unc = predictive_coding_layer(x, h, prepared, dims)
    (pred, esig, unc) = jax.block_until_ready((pred, esig, unc))

    rpred, resig, runc = reference_forward(x, h, params)
    assert pred.shape == (B, PRED) and esig.shape == (B, HIDDEN) and unc.shape == (B, 1)
    _check(pred, rpred, "prediction")
    _check(esig, resig, "error_signal")
    _check(unc, runc, "uncertainty")
    assert bool(jnp.all(unc > 0.0)), "softplus output must be positive"

    # --- path 2: input_size == prediction_size (nn.Identity projection) ---------
    params_id = init_params(jax.random.PRNGKey(1), PRED, HIDDEN, PRED)
    prepared_id, dims_id = prepare_params(params_id)
    x2 = jax.random.normal(jax.random.PRNGKey(2), (B, PRED), jnp.float32)

    p2, e2, u2 = predictive_coding_layer(x2, h, prepared_id, dims_id)
    (p2, e2, u2) = jax.block_until_ready((p2, e2, u2))
    rp2, re2, ru2 = reference_forward(x2, h, params_id)
    _check(p2, rp2, "prediction(identity)")
    _check(e2, re2, "error_signal(identity)")
    _check(u2, ru2, "uncertainty(identity)")

    print("KERNEL_OK")
</pallas_src>

<mosaic_0001>
module attributes {stable_mosaic.version = 11 : i64} {
  func.func @_pc_kernel(%arg0: i32, %arg1: memref<8x128xbf16, #tpu.memory_space<vmem>>, %arg2: memref<8x128xbf16, #tpu.memory_space<vmem>>, %arg3: memref<128x128xbf16, #tpu.memory_space<vmem>>, %arg4: memref<128x256xbf16, #tpu.memory_space<vmem>>, %arg5: memref<128x128xbf16, #tpu.memory_space<vmem>>, %arg6: memref<128x128xbf16, #tpu.memory_space<vmem>>, %arg7: memref<128x128xbf16, #tpu.memory_space<vmem>>, %arg8: memref<1x128xf32, #tpu.memory_space<vmem>>, %arg9: memref<1x896xf32, #tpu.memory_space<vmem>>, %arg10: memref<8x128xf32, #tpu.memory_space<vmem>>, %arg11: memref<8x128xf32, #tpu.memory_space<vmem>>, %arg12: memref<8x128xf32, #tpu.memory_space<vmem>>) attributes {dimension_semantics = [#tpu.dimension_semantics<parallel>], iteration_bounds = array<i64: 1>, scalar_prefetch = 0 : i64, scratch_operands = 0 : i64, tpu.core_type = #tpu.core_type<tc>, window_params = [{transform_indices = @transform_0, window_bounds = array<i64: 8, 128>}, {transform_indices = @transform_1, window_bounds = array<i64: 8, 128>}, {pipeline_mode = #tpu.pipeline_mode<synchronous>, transform_indices = @transform_2, window_bounds = array<i64: 128, 128>}, {pipeline_mode = #tpu.pipeline_mode<synchronous>, transform_indices = @transform_3, window_bounds = array<i64: 128, 256>}, {pipeline_mode = #tpu.pipeline_mode<synchronous>, transform_indices = @transform_4, window_bounds = array<i64: 128, 128>}, {pipeline_mode = #tpu.pipeline_mode<synchronous>, transform_indices = @transform_5, window_bounds = array<i64: 128, 128>}, {pipeline_mode = #tpu.pipeline_mode<synchronous>, transform_indices = @transform_6, window_bounds = array<i64: 128, 128>}, {pipeline_mode = #tpu.pipeline_mode<synchronous>, transform_indices = @transform_7, window_bounds = array<i64: 1, 128>}, {pipeline_mode = #tpu.pipeline_mode<synchronous>, transform_indices = @transform_8, window_bounds = array<i64: 1, 896>}, {transform_indices = @transform_9, window_bounds = array<i64: 8, 128>}, {transform_indices = @transform_10, window_bounds = array<i64: 8, 128>}, {transform_indices = @transform_11, window_bounds = array<i64: 8, 128>}]} {
    %c0 = arith.constant 0 : index
    %c0_0 = arith.constant 0 : index
    %0 = vector.load %arg2[%c0, %c0_0] : memref<8x128xbf16, #tpu.memory_space<vmem>>, vector<8x128xbf16>
    %c0_1 = arith.constant 0 : index
    %c0_2 = arith.constant 0 : index
    %1 = vector.load %arg4[%c0_1, %c0_2] : memref<128x256xbf16, #tpu.memory_space<vmem>>, vector<128x256xbf16>
    %cst = arith.constant dense<0.000000e+00> : vector<8x256xf32>
    %2 = tpu.matmul %0, %1, %cst {dimension_numbers = #tpu.dot_dimension_numbers<[1], [0], [0], [1], [0, 0, 1, 1], [], []>} : vector<8x128xbf16>, vector<128x256xbf16>, vector<8x256xf32> -> vector<8x256xf32>
    %c0_3 = arith.constant 0 : index
    %c128 = arith.constant 128 : index
    %3 = vector.load %arg9[%c0_3, %c128] : memref<1x896xf32, #tpu.memory_space<vmem>>, vector<1x256xf32>
    %4 = vector.broadcast %3 : vector<1x256xf32> to vector<8x256xf32>
    %5 = arith.addf %2, %4 : vector<8x256xf32>
    %6 = vector.extract_strided_slice %5 {offsets = [0, 0], sizes = [8, 128], strides = [1, 1]} : vector<8x256xf32> to vector<8x128xf32>
    %7 = math.tanh %6 : vector<8x128xf32>
    %8 = vector.extract_strided_slice %5 {offsets = [0, 128], sizes = [8, 128], strides = [1, 1]} : vector<8x256xf32> to vector<8x128xf32>
    %cst_4 = arith.constant 0.000000e+00 : f32
    %9 = vector.broadcast %cst_4 : f32 to vector<8x128xf32>
    %10 = arith.maximumf %8, %9 : vector<8x128xf32>
    %11 = arith.truncf %7 : vector<8x128xf32> to vector<8x128xbf16>
    %c0_5 = arith.constant 0 : index
    %c0_6 = arith.constant 0 : index
    %12 = vector.load %arg5[%c0_5, %c0_6] : memref<128x128xbf16, #tpu.memory_space<vmem>>, vector<128x128xbf16>
    %cst_7 = arith.constant dense<0.000000e+00> : vector<8x128xf32>
    %13 = tpu.matmul %11, %12, %cst_7 {dimension_numbers = #tpu.dot_dimension_numbers<[1], [0], [0], [1], [0, 0, 1, 1], [], []>} : vector<8x128xbf16>, vector<128x128xbf16>, vector<8x128xf32> -> vector<8x128xf32>
    %c0_8 = arith.constant 0 : index
    %c384 = arith.constant 384 : index
    %14 = vector.load %arg9[%c0_8, %c384] : memref<1x896xf32, #tpu.memory_space<vmem>>, vector<1x128xf32>
    %15 = vector.broadcast %14 : vector<1x128xf32> to vector<8x128xf32>
    %16 = arith.addf %13, %15 : vector<8x128xf32>
    %c0_9 = arith.constant 0 : index
    %c0_10 = arith.constant 0 : index
    %17 = vector.load %arg1[%c0_9, %c0_10] : memref<8x128xbf16, #tpu.memory_space<vmem>>, vector<8x128xbf16>
    %c0_11 = arith.constant 0 : index
    %c0_12 = arith.constant 0 : index
    %18 = vector.load %arg3[%c0_11, %c0_12] : memref<128x128xbf16, #tpu.memory_space<vmem>>, vector<128x128xbf16>
    %cst_13 = arith.constant dense<0.000000e+00> : vector<8x128xf32>
    %19 = tpu.matmul %17, %18, %cst_13 {dimension_numbers = #tpu.dot_dimension_numbers<[1], [0], [0], [1], [0, 0, 1, 1], [], []>} : vector<8x128xbf16>, vector<128x128xbf16>, vector<8x128xf32> -> vector<8x128xf32>
    %c0_14 = arith.constant 0 : index
    %c0_15 = arith.constant 0 : index
    %20 = vector.load %arg9[%c0_14, %c0_15] : memref<1x896xf32, #tpu.memory_space<vmem>>, vector<1x128xf32>
    %21 = vector.broadcast %20 : vector<1x128xf32> to vector<8x128xf32>
    %22 = arith.addf %19, %21 : vector<8x128xf32>
    %23 = arith.subf %22, %16 : vector<8x128xf32>
    %24 = arith.truncf %23 : vector<8x128xf32> to vector<8x128xbf16>
    %c0_16 = arith.constant 0 : index
    %c0_17 = arith.constant 0 : index
    %25 = vector.load %arg6[%c0_16, %c0_17] : memref<128x128xbf16, #tpu.memory_space<vmem>>, vector<128x128xbf16>
    %cst_18 = arith.constant dense<0.000000e+00> : vector<8x128xf32>
    %26 = tpu.matmul %24, %25, %cst_18 {dimension_numbers = #tpu.dot_dimension_numbers<[1], [0], [0], [1], [0, 0, 1, 1], [], []>} : vector<8x128xbf16>, vector<128x128xbf16>, vector<8x128xf32> -> vector<8x128xf32>
    %c0_19 = arith.constant 0 : index
    %c512 = arith.constant 512 : index
    %27 = vector.load %arg9[%c0_19, %c512] : memref<1x896xf32, #tpu.memory_space<vmem>>, vector<1x128xf32>
    %28 = vector.broadcast %27 : vector<1x128xf32> to vector<8x128xf32>
    %29 = arith.addf %26, %28 : vector<8x128xf32>
    %cst_20 = arith.constant 0.000000e+00 : f32
    %30 = vector.broadcast %cst_20 : f32 to vector<8x128xf32>
    %31 = arith.maximumf %29, %30 : vector<8x128xf32>
    %32 = arith.truncf %31 : vector<8x128xf32> to vector<8x128xbf16>
    %c0_21 = arith.constant 0 : index
    %c0_22 = arith.constant 0 : index
    %33 = vector.load %arg7[%c0_21, %c0_22] : memref<128x128xbf16, #tpu.memory_space<vmem>>, vector<128x128xbf16>
    %cst_23 = arith.constant dense<0.000000e+00> : vector<8x128xf32>
    %34 = tpu.matmul %32, %33, %cst_23 {dimension_numbers = #tpu.dot_dimension_numbers<[1], [0], [0], [1], [0, 0, 1, 1], [], []>} : vector<8x128xbf16>, vector<128x128xbf16>, vector<8x128xf32> -> vector<8x128xf32>
    %c0_24 = arith.constant 0 : index
    %c640 = arith.constant 640 : index
    %35 = vector.load %arg9[%c0_24, %c640] : memref<1x896xf32, #tpu.memory_space<vmem>>, vector<1x128xf32>
    %36 = vector.broadcast %35 : vector<1x128xf32> to vector<8x128xf32>
    %37 = arith.addf %34, %36 : vector<8x128xf32>
    %c0_25 = arith.constant 0 : index
    %c0_26 = arith.constant 0 : index
    %38 = vector.load %arg8[%c0_25, %c0_26] : memref<1x128xf32, #tpu.memory_space<vmem>>, vector<1x128xf32>
    %39 = vector.broadcast %38 : vector<1x128xf32> to vector<8x128xf32>
    %40 = arith.mulf %10, %39 : vector<8x128xf32>
    %cst_27 = arith.constant dense<0.000000e+00> : vector<8xf32>
    %41 = vector.multi_reduction <add>, %40, %cst_27 [1] : vector<8x128xf32> to vector<8xf32>
    %42 = vector.shape_cast %41 : vector<8xf32> to vector<8x1xf32>
    %c0_28 = arith.constant 0 : index
    %c768 = arith.constant 768 : index
    %43 = vector.load %arg9[%c0_28, %c768] : memref<1x896xf32, #tpu.memory_space<vmem>>, vector<1x1xf32>
    %44 = vector.broadcast %43 : vector<1x1xf32> to vector<8x1xf32>
    %45 = arith.addf %42, %44 : vector<8x1xf32>
    %cst_29 = arith.constant 0.000000e+00 : f32
    %46 = vector.broadcast %cst_29 : f32 to vector<8x1xf32>
    %47 = arith.maximumf %45, %46 : vector<8x1xf32>
    %48 = math.absf %45 : vector<8x1xf32>
    %cst_30 = arith.constant 0.000000e+00 : f32
    %49 = vector.broadcast %cst_30 : f32 to vector<8x1xf32>
    %50 = arith.subf %49, %48 : vector<8x1xf32>
    %51 = math.exp %50 : vector<8x1xf32>
    %cst_31 = arith.constant 1.000000e+00 : f32
    %52 = vector.broadcast %cst_31 : f32 to vector<8x1xf32>
    %53 = arith.addf %52, %51 : vector<8x1xf32>
    %54 = math.log %53 : vector<8x1xf32>
    %55 = arith.addf %47, %54 : vector<8x1xf32>
    %c0_32 = arith.constant 0 : index
    %c0_33 = arith.constant 0 : index
    %56 = vector.load %arg10[%c0_32, %c0_33] : memref<8x128xf32, #tpu.memory_space<vmem>>, vector<8x128xf32>
    tpu.vector_store %arg10[%c0_32, %c0_33], %16 {strides = array<i32>} : memref<8x128xf32, #tpu.memory_space<vmem>>, vector<8x128xf32>,
    %c0_34 = arith.constant 0 : index
    %c0_35 = arith.constant 0 : index
    %57 = vector.load %arg11[%c0_34, %c0_35] : memref<8x128xf32, #tpu.memory_space<vmem>>, vector<8x128xf32>
    tpu.vector_store %arg11[%c0_34, %c0_35], %37 {strides = array<i32>} : memref<8x128xf32, #tpu.memory_space<vmem>>, vector<8x128xf32>,
    %58 = vector.shape_cast %55 : vector<8x1xf32> to vector<8x1xf32>
    %59 = vector.broadcast %58 : vector<8x1xf32> to vector<8x128xf32>
    %c0_36 = arith.constant 0 : index
    %c0_37 = arith.constant 0 : index
    %60 = vector.load %arg12[%c0_36, %c0_37] : memref<8x128xf32, #tpu.memory_space<vmem>>, vector<8x128xf32>
    tpu.vector_store %arg12[%c0_36, %c0_37], %59 {strides = array<i32>} : memref<8x128xf32, #tpu.memory_space<vmem>>, vector<8x128xf32>,
    return
  }
  func.func @transform_0(%arg0: i32) -> (i32, i32) {
    %c0_i32 = arith.constant 0 : i32
    %c0_i32_0 = arith.constant 0 : i32
    return %arg0, %c0_i32 : i32, i32
  }
  func.func @transform_1(%arg0: i32) -> (i32, i32) {
    %c0_i32 = arith.constant 0 : i32
    %c0_i32_0 = arith.constant 0 : i32
    return %arg0, %c0_i32 : i32, i32
  }
  func.func @transform_2(%arg0: i32) -> (i32, i32) {
    %c0_i32 = arith.constant 0 : i32
    %c0_i32_0 = arith.constant 0 : i32
    %c0_i32_1 = arith.constant 0 : i32
    return %c0_i32, %c0_i32_0 : i32, i32
  }
  func.func @transform_3(%arg0: i32) -> (i32, i32) {
    %c0_i32 = arith.constant 0 : i32
    %c0_i32_0 = arith.constant 0 : i32
    %c0_i32_1 = arith.constant 0 : i32
    return %c0_i32, %c0_i32_0 : i32, i32
  }
  func.func @transform_4(%arg0: i32) -> (i32, i32) {
    %c0_i32 = arith.constant 0 : i32
    %c0_i32_0 = arith.constant 0 : i32
    %c0_i32_1 = arith.constant 0 : i32
    return %c0_i32, %c0_i32_0 : i32, i32
  }
  func.func @transform_5(%arg0: i32) -> (i32, i32) {
    %c0_i32 = arith.constant 0 : i32
    %c0_i32_0 = arith.constant 0 : i32
    %c0_i32_1 = arith.constant 0 : i32
    return %c0_i32, %c0_i32_0 : i32, i32
  }
  func.func @transform_6(%arg0: i32) -> (i32, i32) {
    %c0_i32 = arith.constant 0 : i32
    %c0_i32_0 = arith.constant 0 : i32
    %c0_i32_1 = arith.constant 0 : i32
    return %c0_i32, %c0_i32_0 : i32, i32
  }
  func.func @transform_7(%arg0: i32) -> (i32, i32) {
    %c0_i32 = arith.constant 0 : i32
    %c0_i32_0 = arith.constant 0 : i32
    %c0_i32_1 = arith.constant 0 : i32
    return %c0_i32, %c0_i32_0 : i32, i32
  }
  func.func @transform_8(%arg0: i32) -> (i32, i32) {
    %c0_i32 = arith.constant 0 : i32
    %c0_i32_0 = arith.constant 0 : i32
    %c0_i32_1 = arith.constant 0 : i32
    return %c0_i32, %c0_i32_0 : i32, i32
  }
  func.func @transform_9(%arg0: i32) -> (i32, i32) {
    %c0_i32 = arith.constant 0 : i32
    %c0_i32_0 = arith.constant 0 : i32
    return %arg0, %c0_i32 : i32, i32
  }
  func.func @transform_10(%arg0: i32) -> (i32, i32) {
    %c0_i32 = arith.constant 0 : i32
    %c0_i32_0 = arith.constant 0 : i32
    return %arg0, %c0_i32 : i32, i32
  }
  func.func @transform_11(%arg0: i32) -> (i32, i32) {
    %c0_i32 = arith.constant 0 : i32
    %c0_i32_0 = arith.constant 0 : i32
    return %arg0, %c0_i32 : i32, i32
  }
}

</mosaic_0001>

<bundles_post_ra>
// kernel: predictive_coding_layer.1
= control target key start
LH: loop header
LB: loop body
LE: loop exit
PB: predicated region body
PF: predicated region fallthrough
CT: control target
= control target key end

     0   :  { %17 = vsyncpa [#allocation3], 0  ;;  %s1337_s0 = inlined_call_operand.vmem [shape: bf16[8,128], index: 0, kind: input, shape index: {}]   ;;  %s1338_s1 = inlined_call_operand.vmem [shape: bf16[8,128], index: 1, kind: input, shape index: {}]   ;;  %s1339_s2 = inlined_call_operand.hbm [shape: bf16[128,128], index: 2, kind: input, shape index: {}]   ;;  %s1340_s3 = inlined_call_operand.hbm [shape: bf16[128,256], index: 3, kind: input, shape index: {}]   ;;  %s1341_s4 = inlined_call_operand.hbm [shape: bf16[128,128], index: 4, kind: input, shape index: {}]   ;;  %s1342_s5 = inlined_call_operand.hbm [shape: bf16[128,128], index: 5, kind: input, shape index: {}]   ;;  %s1343_s6 = inlined_call_operand.hbm [shape: bf16[128,128], index: 6, kind: input, shape index: {}]   ;;  %s1344_s7 = inlined_call_operand.vmem [shape: f32[1,128], index: 7, kind: input, shape index: {}]   ;;  %s1345_s8 = inlined_call_operand.vmem [shape: f32[1,896], index: 8, kind: input, shape index: {}]   ;;  %s1346_s9 = inlined_call_operand.vmem [shape: f32[8,128], index: 9, kind: output, shape index: {0}]   ;;  %s1347_s10 = inlined_call_operand.vmem [shape: f32[8,128], index: 10, kind: output, shape index: {1}]   ;;  %s1348_s11 = inlined_call_operand.vmem [shape: f32[8,128], index: 11, kind: output, shape index: {2}]  }
   0x1   :  { %18 = vsyncpa [#allocation5], 0 }
   0x2   :  { %19 = vsyncpa [#allocation8], 0  ;;  %s1117_s17 = smov [#allocation4]   ;;  %s1001_s21 = scalar_lea.hbm %s1340_s3, 2048 }
   0x3   :  { %s41_s18 = sshll.u32 %s1117_s17, 4  ;;  %p1002_p0 = scmp.ne.s32.totalorder %s1340_s3, %s1001_s21  ;;  %s42_s18 = int_to_ptr.vmem [resolvable:$true] %s41_s18 }
   0x4   :  { %p1005_p1 = scmp.lt.u32.totalorder %s1001_s21, %s1340_s3 }
   0x6   :  { %p1007_p2 = pnand %p1005_p1, %p1002_p0 }
   0x8   :  { %1010 = shalt.err (!%p1007_p2)
}
   0x9   :  { %s1011_s26 = scalar_lea.vmem %s42_s18, 2048  ;;  %p1016_p4 = scmp.lt.s32.totalorder %s42_s18, %s42_s18 }
   0xa   :  { %p1012_p3 = scmp.ne.s32.totalorder %s42_s18, %s1011_s26  ;;  %p1017_p5 = scmp.lt.s32.totalorder %s1011_s26, %s1011_s26 }
   0xc   :  { %p1018_p6 = por %p1017_p5, %p1016_p4 }
   0xe   :  { %p1019_p7 = pnand %p1018_p6, %p1012_p3 }
  0x10   :  { %1022 = shalt.err (!%p1019_p7)
}
  0x11   :  { %s1118_s27 = smov 128   ;;  %s1119_s28 = smov 8  }
  0x12   :  { %47 = dma.hbm_to_vmem [thread:$0]  %s1340_s3, 2048, %s42_s18, [#allocation5], %s1118_s27, %s1118_s27, %s1119_s28  }
  0x13   :  { %s1120_s12 = smov [#allocation7]   ;;  %s1121_s14 = smov [#allocation2]  }
  0x14   :  { %s65_s13 = sshll.u32 %s1120_s12, 4  ;;  %s29_s15 = sshll.u32 %s1121_s14, 4  ;;  %s66_s13 = int_to_ptr.vmem [resolvable:$true] %s65_s13  ;;  %s30_s15 = int_to_ptr.vmem [resolvable:$true] %s29_s15 }
  0x15   :  { %s1023_s19 = scalar_lea.hbm %s1342_s5, 1024 }
  0x16   :  { %p1024_p8 = scmp.ne.s32.totalorder %s1342_s5, %s1023_s19  ;;  %p1027_p9 = scmp.lt.u32.totalorder %s1023_s19, %s1342_s5 }
  0x18   :  { %p1029_p10 = pnand %p1027_p9, %p1024_p8 }
  0x1a   :  { %1032 = shalt.err (!%p1029_p10)
}
  0x1b   :  { %s1033_s3 = scalar_lea.vmem %s66_s13, 1024  ;;  %p1038_p12 = scmp.lt.s32.totalorder %s66_s13, %s66_s13 }
  0x1c   :  { %p1034_p11 = scmp.ne.s32.totalorder %s66_s13, %s1033_s3  ;;  %p1039_p13 = scmp.lt.s32.totalorder %s1033_s3, %s1033_s3 }
  0x1e   :  { %p1040_p0 = por %p1039_p13, %p1038_p12 }
  0x20   :  { %p1041_p1 = pnand %p1040_p0, %p1034_p11 }
  0x22   :  { %1044 = shalt.err (!%p1041_p1)
}
  0x23   :  { %s1122_s18 = smov 64   ;;  %s1123_s24 = smov 4  }
  0x24   :  { %71 = dma.hbm_to_vmem [thread:$0]  %s1342_s5, 1024, %s66_s13, [#allocation8], %s1122_s18, %s1122_s18, %s1123_s24  }
  0x25   :  { %s1045_s29 = scalar_lea.hbm %s1339_s2, 1024 }
  0x26   :  { %p1046_p2 = scmp.ne.s32.totalorder %s1339_s2, %s1045_s29  ;;  %p1049_p3 = scmp.lt.u32.totalorder %s1045_s29, %s1339_s2 }
  0x28   :  { %p1051_p4 = pnand %p1049_p3, %p1046_p2 }
  0x2a   :  { %1054 = shalt.err (!%p1051_p4)
}
  0x2b   :  { %s1055_s17 = scalar_lea.vmem %s30_s15, 1024  ;;  %p1060_p6 = scmp.lt.s32.totalorder %s30_s15, %s30_s15 }
  0x2c   :  { %p1056_p5 = scmp.ne.s32.totalorder %s30_s15, %s1055_s17  ;;  %p1061_p7 = scmp.lt.s32.totalorder %s1055_s17, %s1055_s17 }
  0x2e   :  { %p1062_p8 = por %p1061_p7, %p1060_p6 }
  0x30   :  { %p1063_p9 = pnand %p1062_p8, %p1056_p5 }
  0x32   :  { %1066 = shalt.err (!%p1063_p9)
}
  0x33   :  { %35 = dma.hbm_to_vmem [thread:$0]  %s1339_s2, 1024, %s30_s15, [#allocation3], %s1122_s18, %s1122_s18, %s1123_s24  }
  0x34   :  { %s1124_s19 = smov [#allocation6]   ;;  %s1125_s21 = smov [#allocation9]  }
  0x35   :  { %s53_s20 = sshll.u32 %s1124_s19, 4  ;;  %s77_s22 = sshll.u32 %s1125_s21, 4  ;;  %s54_s20 = int_to_ptr.vmem [resolvable:$true] %s53_s20  ;;  %s78_s22 = int_to_ptr.vmem [resolvable:$true] %s77_s22 }
  0x36   :  { %s1067_s25 = scalar_lea.hbm %s1341_s4, 1024 }
  0x37   :  { %p1068_p10 = scmp.ne.s32.totalorder %s1341_s4, %s1067_s25  ;;  %p1071_p11 = scmp.lt.u32.totalorder %s1067_s25, %s1341_s4 }
  0x39   :  { %p1073_p12 = pnand %p1071_p11, %p1068_p10 }
  0x3b   :  { %1076 = shalt.err (!%p1073_p12)
}
  0x3c   :  { %s1077_s2 = scalar_lea.vmem %s54_s20, 1024  ;;  %p1082_p0 = scmp.lt.s32.totalorder %s54_s20, %s54_s20 }
  0x3d   :  { %p1078_p13 = scmp.ne.s32.totalorder %s54_s20, %s1077_s2  ;;  %p1083_p1 = scmp.lt.s32.totalorder %s1077_s2, %s1077_s2 }
  0x3f   :  { %p1084_p2 = por %p1083_p1, %p1082_p0 }
  0x41   :  { %p1085_p3 = pnand %p1084_p2, %p1078_p13 }
  0x43   :  { %1088 = shalt.err (!%p1085_p3)
}
  0x44   :  { %59 = dma.hbm_to_vmem [thread:$0]  %s1341_s4, 1024, %s54_s20, [#allocation5], %s1122_s18, %s1122_s18, %s1123_s24  }
  0x45   :  { %s1089_s16 = scalar_lea.hbm %s1343_s6, 1024 }
  0x46   :  { %p1090_p4 = scmp.ne.s32.totalorder %s1343_s6, %s1089_s16  ;;  %p1093_p5 = scmp.lt.u32.totalorder %s1089_s16, %s1343_s6 }
  0x48   :  { %p1095_p6 = pnand %p1093_p5, %p1090_p4 }
  0x4a   :  { %1098 = shalt.err (!%p1095_p6)
}
  0x4b   :  { %s1099_s21 = scalar_lea.vmem %s78_s22, 1024  ;;  %p1104_p8 = scmp.lt.s32.totalorder %s78_s22, %s78_s22 }
  0x4c   :  { %p1100_p7 = scmp.ne.s32.totalorder %s78_s22, %s1099_s21  ;;  %p1105_p9 = scmp.lt.s32.totalorder %s1099_s21, %s1099_s21 }
  0x4e   :  { %p1106_p10 = por %p1105_p9, %p1104_p8 }
  0x50   :  { %p1107_p11 = pnand %p1106_p10, %p1100_p7 }
  0x52   :  { %1110 = shalt.err (!%p1107_p11)
}
  0x53   :  { %83 = dma.hbm_to_vmem [thread:$0]  %s1343_s6, 1024, %s78_s22, [#allocation8], %s1122_s18, %s1122_s18, %s1123_s24  }
  0x54   :  { %1111 = dma.done.wait [#allocation3], 1024  }
  0x55   :  { %1112 = vsyncadd [#allocation3], 4294966272 }
  0x56   :  { %1113 = dma.done.wait [#allocation5], 3072  }
  0x57   :  { %1114 = vsyncadd [#allocation5], 4294964224 }
  0x58   :  { %1115 = dma.done.wait [#allocation8], 2048  }
  0x59   :  { %1116 = vsyncadd [#allocation8], 4294965248  ;;  %v1126_v0 = vmov 0   ;;  %v1127_v1 = vmov 0.0   ;;  %v939_v2 = vld [vmem:[#allocation4 + $0x4] ss:$8 sps:$4 sm:$0xff]   ;;  %v123_v36 = vlaneseq }
  0x5a   :  { %245 = vmatprep.mubr.bf16.mxu0 %v1126_v0  ;;  %846 = vmatprep.subr.bf16.mxu1 %v1127_v1  ;;  %v941_v3 = vld [vmem:[#allocation4] ss:$8 sps:$4 sm:$0xff]   ;;  %v942_v4 = vld [vmem:[#allocation4 + $0x14] ss:$8 sps:$4 sm:$0xff]   ;;  %v944_v5 = vld [vmem:[#allocation4 + $0x10] ss:$8 sps:$4 sm:$0xff]  }
  0x5b   :  { %938 = vset.pattern.permute.xlu0 %v1126_v0  ;;  %213 = vmatprep.subr.bf16.mxu0 %v939_v2  ;;  %v945_v6 = vld [vmem:[#allocation4 + $0x24] ss:$8 sps:$4 sm:$0xff]   ;;  %v947_v7 = vld [vmem:[#allocation4 + $0x20] ss:$8 sps:$4 sm:$0xff]   ;;  %v948_v8 = vld [vmem:[#allocation4 + $0x34] ss:$8 sps:$4 sm:$0xff]  }
  0x5c   :  { %214 = vmatpush1.bf16.msra.mxu0 %v941_v3  ;;  %v950_v9 = vld [vmem:[#allocation4 + $0x30] ss:$8 sps:$4 sm:$0xff]   ;;  %v951_v10 = vld [vmem:[#allocation4 + $0x44] ss:$8 sps:$4 sm:$0xff]   ;;  %v953_v13 = vld [vmem:[#allocation4 + $0x40] ss:$8 sps:$4 sm:$0xff]  }
  0x5d   :  { %215 = vmatprep.subr.bf16.mxu0 %v942_v4  ;;  %v964_v11 = vld [vmem:[#allocation6] sm:$0xff]   ;;  %v966_v12 = vld [vmem:[#allocation6 + $0x8] sm:$0xff]   ;;  %v954_v14 = vld [vmem:[#allocation4 + $0x54] ss:$8 sps:$4 sm:$0xff]   ;;  %vm1128_vm0 = vmmov 0   ;;  %v124_v37 = vshrl.u32 %v123_v36, 7 }
  0x5e   :  { %847 = vmatpush3.bf16.msra.mxu1 %v964_v11  ;;  %v956_v15 = vld [vmem:[#allocation4 + $0x50] ss:$8 sps:$4 sm:$0xff]   ;;  %v957_v17 = vld [vmem:[#allocation4 + $0x64] ss:$8 sps:$4 sm:$0xff]   ;;  %v959_v19 = vld [vmem:[#allocation4 + $0x60] ss:$8 sps:$4 sm:$0xff]   ;;  %862 = vmatprep.mubr.msk.bf16.mxu1 %vm1128_vm0, %v1127_v1 }
  0x5f   :  { %848 = vmatprep.subr.bf16.mxu1 %v1127_v1  ;;  %v968_v16 = vld [vmem:[#allocation6 + $0x10] sm:$0xff]   ;;  %v970_v18 = vld [vmem:[#allocation6 + $0x18] sm:$0xff]   ;;  %v104_v22 = vld [vmem:[%s1338_s1] sm:$0xf]  ;;  %v125_v38 = vsub.s32 0, %v124_v37  ;;  %v129_v40 = vsub.s32 1, %v124_v37 }
  0x60   :  { %216 = vmatpush1.bf16.msra.mxu0 %v944_v5  ;;  %v960_v20 = vld [vmem:[#allocation4 + $0x74] ss:$8 sps:$4 sm:$0xff]   ;;  %v962_v21 = vld [vmem:[#allocation4 + $0x70] ss:$8 sps:$4 sm:$0xff]   ;;  %v963_v23 = vld [vmem:[#allocation2] sm:$0xff]  }
  0x61   :  { %217 = vmatprep.subr.bf16.mxu0 %v945_v6  ;;  %v965_v24 = vld [vmem:[#allocation2 + $0x8] sm:$0xff]   ;;  %v967_v25 = vld [vmem:[#allocation2 + $0x10] sm:$0xff]   ;;  %v969_v26 = vld [vmem:[#allocation2 + $0x18] sm:$0xff]  }
  0x62   :  { %849 = vmatpush3.bf16.msra.mxu1 %v966_v12  ;;  %v971_v27 = vld [vmem:[#allocation2 + $0x20] sm:$0xff]   ;;  %v973_v29 = vld [vmem:[#allocation2 + $0x28] sm:$0xff]   ;;  %v975_v31 = vld [vmem:[#allocation2 + $0x30] sm:$0xff]  }
  0x63   :  { %850 = vmatprep.subr.bf16.mxu1 %v1127_v1  ;;  %v972_v28 = vld [vmem:[#allocation6 + $0x20] sm:$0xff]   ;;  %v974_v30 = vld [vmem:[#allocation6 + $0x28] sm:$0xff]   ;;  %v976_v32 = vld [vmem:[#allocation6 + $0x30] sm:$0xff]  }
  0x64   :  { %218 = vmatpush1.bf16.msra.mxu0 %v947_v7  ;;  %v977_v33 = vld [vmem:[#allocation2 + $0x38] sm:$0xff]   ;;  %v368_v35 = vld [vmem:[%s1337_s0] sm:$0xf]  ;;  %v980_v55 = vld [vmem:[#allocation7 + $0x8] sm:$0xff]  }
  0x65   :  { %219 = vmatprep.subr.bf16.mxu0 %v948_v8  ;;  %v978_v34 = vld [vmem:[#allocation6 + $0x38] sm:$0xff]   ;;  %v121_v39 = vld [vmem:[%s1345_s8 + $0x1] sm:$0x3]  ;;  %v808_v49 = vld [vmem:[%s1344_s7] ss:$0 sm:$0xff] }
  0x66   :  { %851 = vmatpush3.bf16.msra.mxu1 %v968_v16  ;;  %v126_v41 = vrot.slane %v121_v39, %v125_v38  ;;  %v130_v42 = vrot.slane %v121_v39, %v129_v40  ;;  %v979_v54 = vld [vmem:[#allocation7] sm:$0xff]   ;;  %v981_v56 = vld [vmem:[#allocation7 + $0x10] sm:$0xff]   ;;  %v982_v57 = vld [vmem:[#allocation7 + $0x18] sm:$0xff]  }
  0x67   :  { %852 = vmatprep.subr.bf16.mxu1 %v1127_v1  ;;  %v983_v58 = vld [vmem:[#allocation7 + $0x20] sm:$0xff]   ;;  %v984_v59 = vld [vmem:[#allocation7 + $0x28] sm:$0xff]   ;;  %v985_v62 = vld [vmem:[#allocation7 + $0x30] sm:$0xff]  }
  0x68   :  { %220 = vmatpush1.bf16.msra.mxu0 %v950_v9  ;;  %v986_v2 = vld [vmem:[#allocation7 + $0x38] sm:$0xff]   ;;  %v809_v3 = vld [vmem:[%s1345_s8 + $0x6] ss:$0 sm:$0xff]  ;;  %v988_v16 = vld [vmem:[#allocation9 + $0x8] sm:$0xff]  }
  0x69   :  { %221 = vmatprep.subr.bf16.mxu0 %v951_v10 }
  0x6a   :  { %853 = vmatpush3.bf16.msra.mxu1 %v970_v18  ;;  %v990_v18 = vld [vmem:[#allocation9 + $0x18] sm:$0xff]  }
  0x6b   :  { %854 = vmatprep.subr.bf16.mxu1 %v1127_v1 }
  0x6c   :  { %222 = vmatpush1.bf16.msra.mxu0 %v953_v13 }
  0x6d   :  { %223 = vmatprep.subr.bf16.mxu0 %v954_v14 }
  0x6e   :  { %855 = vmatpush3.bf16.msra.mxu1 %v972_v28 }
  0x6f   :  { %856 = vmatprep.subr.bf16.mxu1 %v1127_v1 }
  0x70   :  { %224 = vmatpush1.bf16.msra.mxu0 %v956_v15  ;;  %v987_v15 = vld [vmem:[#allocation9] sm:$0xff]  }
  0x71   :  { %225 = vmatprep.subr.bf16.mxu0 %v957_v17  ;;  %v989_v17 = vld [vmem:[#allocation9 + $0x10] sm:$0xff]  }
  0x72   :  { %857 = vmatpush3.bf16.msra.mxu1 %v974_v30 }
  0x73   :  { %858 = vmatprep.subr.bf16.mxu1 %v1127_v1 }
  0x74   :  { %226 = vmatpush1.bf16.msra.mxu0 %v959_v19  ;;  %v991_v19 = vld [vmem:[#allocation9 + $0x20] sm:$0xff]  }
  0x75   :  { %227 = vmatprep.subr.bf16.mxu0 %v960_v20  ;;  %v992_v20 = vld [vmem:[#allocation9 + $0x28] sm:$0xff]  }
  0x76   :  { %859 = vmatpush3.bf16.msra.mxu1 %v976_v32  ;;  %v993_v32 = vld [vmem:[#allocation9 + $0x30] sm:$0xff]  }
  0x77   :  { %860 = vmatprep.subr.bf16.mxu1 %v1127_v1 }
  0x78   :  { %228 = vmatpush1.bf16.msra.mxu0 %v962_v21  ;;  %v781_v21 = vld [vmem:[%s1345_s8] ss:$0 sm:$0xff] }
  0x79   :  { %866 = vmatprep.subr.bf16.mxu0 %v1127_v1 }
  0x7a   :  { %861 = vmatpush3.bf16.msra.mxu1 %v978_v34  ;;  %v790_v34 = vld [vmem:[%s1345_s8 + $0x4] ss:$0 sm:$0xff] }
  0x7b   :  { %246 = vmatmul.mubr.bf16.vlgmr.msra.gmra.mrb[0].mxu0 %v104_v22  ;;  %886 = vmatprep.subr.bf16.mxu1 %v1127_v1  ;;  %v772_v22 = vld [vmem:[%s1345_s8 + $0x3] ss:$0 sm:$0xff] }
  0x7c   :  { %867 = vmatpush3.bf16.msra.mxu0 %v963_v23  ;;  %882 = vmatprep.mubr.msk.bf16.mxu0 %vm1128_vm0, %v1127_v1 }
  0x7d   :  { %868 = vmatprep.subr.bf16.mxu0 %v1127_v1 }
  0x80   :  { %869 = vmatpush3.bf16.msra.mxu0 %v965_v24 }
  0x81   :  { %870 = vmatprep.subr.bf16.mxu0 %v1127_v1 }
  0x84   :  { %871 = vmatpush3.bf16.msra.mxu0 %v967_v25 }
  0x85   :  { %872 = vmatprep.subr.bf16.mxu0 %v1127_v1 }
  0x88   :  { %873 = vmatpush3.bf16.msra.mxu0 %v969_v26 }
  0x89   :  { %874 = vmatprep.subr.bf16.mxu0 %v1127_v1 }
  0x8c   :  { %875 = vmatpush3.bf16.msra.mxu0 %v971_v27 }
  0x8d   :  { %876 = vmatprep.subr.bf16.mxu0 %v1127_v1 }
  0x90   :  { %877 = vmatpush3.bf16.msra.mxu0 %v973_v29 }
  0x91   :  { %878 = vmatprep.subr.bf16.mxu0 %v1127_v1 }
  0x94   :  { %879 = vmatpush3.bf16.msra.mxu0 %v975_v31 }
  0x95   :  { %880 = vmatprep.subr.bf16.mxu0 %v1127_v1 }
  0x98   :  { %881 = vmatpush3.bf16.msra.mxu0 %v977_v33  ;;  %v994_v33 = vld [vmem:[#allocation9 + $0x38] sm:$0xff]  }
  0x99   :  { %906 = vmatprep.subr.bf16.mxu0 %v1127_v1 }
  0x9b   :  { %883 = vmatmul.mubr.bf16.vlgmr.msra.gmra.mrb[4].mxu0 %v368_v35 }
  0x9c   :  { %922 = vmatprep.mubr.msk.bf16.mxu0 %vm1128_vm0, %v1127_v1  ;;  %907 = vmatpush3.bf16.msra.mxu0 %v987_v15 }
  0x9d   :  { %908 = vmatprep.subr.bf16.mxu0 %v1127_v1 }
  0xa0   :  { %909 = vmatpush3.bf16.msra.mxu0 %v988_v16 }
  0xa1   :  { %910 = vmatprep.subr.bf16.mxu0 %v1127_v1 }
  0xa4   :  { %911 = vmatpush3.bf16.msra.mxu0 %v989_v17 }
  0xa5   :  { %912 = vmatprep.subr.bf16.mxu0 %v1127_v1 }
  0xa8   :  { %913 = vmatpush3.bf16.msra.mxu0 %v990_v18 }
  0xa9   :  { %914 = vmatprep.subr.bf16.mxu0 %v1127_v1 }
  0xac   :  { %915 = vmatpush3.bf16.msra.mxu0 %v991_v19 }
  0xad   :  { %916 = vmatprep.subr.bf16.mxu0 %v1127_v1 }
  0xb0   :  { %917 = vmatpush3.bf16.msra.mxu0 %v992_v20 }
  0xb1   :  { %918 = vmatprep.subr.bf16.mxu0 %v1127_v1 }
  0xb4   :  { %919 = vmatpush3.bf16.msra.mxu0 %v993_v32 }
  0xb5   :  { %920 = vmatprep.subr.bf16.mxu0 %v1127_v1 }
  0xb8   :  { %921 = vmatpush3.bf16.msra.mxu0 %v994_v33 }
 0x14e   :  { %v247_v43 = vpop.f32.mrb[0].mxu0 }
 0x14f   :  { %v248_v44 = vadd.f32 %v247_v43, %v126_v41  ;;  %v249_v45 = vpop.f32.mrb[1].mxu0 }
 0x150   :  { %v250_v46 = vadd.f32 %v249_v45, %v130_v42  ;;  %v251_v47 = vpop.f32.mrb[2].mxu0  ;;  %v799_v42 = vld [vmem:[%s1345_s8 + $0x5] ss:$0 sm:$0xff] }
 0x151   :  { %995 = vtanh.f32 %v248_v44  ;;  %v252_v48 = vpop.f32.mrb[3].mxu0 }
 0x152   :  { %v255_v50 = vmax.f32 %v250_v46, 0.0 }
 0x154   :  { %v713_v51 = vmul.f32 %v808_v49, %v255_v50 }
 0x156   :  { %714 = vadd.xlane.f32.xlu0 %v713_v51 }
 0x15b   :  { %v996_v52 = vpop.eup %995 }
 0x15c   :  { %v256_v53 = vpack.c.bf16 %v996_v52, %v996_v52 }
 0x15e   :  { %863 = vmatmul.mubr.bf16.vlgmr.msra.gmra.mrb[0].mxu1 %v256_v53 }
 0x15f   :  { %902 = vmatprep.mubr.msk.bf16.mxu1 %vm1128_vm0, %v1127_v1  ;;  %887 = vmatpush3.bf16.msra.mxu1 %v979_v54 }
 0x160   :  { %888 = vmatprep.subr.bf16.mxu1 %v1127_v1 }
 0x163   :  { %889 = vmatpush3.bf16.msra.mxu1 %v980_v55 }
 0x164   :  { %890 = vmatprep.subr.bf16.mxu1 %v1127_v1 }
 0x167   :  { %891 = vmatpush3.bf16.msra.mxu1 %v981_v56 }
 0x168   :  { %892 = vmatprep.subr.bf16.mxu1 %v1127_v1 }
 0x16b   :  { %893 = vmatpush3.bf16.msra.mxu1 %v982_v57 }
 0x16c   :  { %894 = vmatprep.subr.bf16.mxu1 %v1127_v1 }
 0x16e   :  { %v474_v60 = vpop.f32.mrb[4].mxu0 }
 0x16f   :  { %895 = vmatpush3.bf16.msra.mxu1 %v983_v58  ;;  %v884_v61 = vpop.f32.mrb[5].mxu0  ;;  %v475_v23 = vadd.f32 %v781_v21, %v474_v60 }
 0x170   :  { %896 = vmatprep.subr.bf16.mxu1 %v1127_v1  ;;  %v477_v63 = vpop.f32.mrb[6].mxu0 }
 0x171   :  { %v885_v0 = vpop.f32.mrb[7].mxu0 }
 0x173   :  { %897 = vmatpush3.bf16.msra.mxu1 %v984_v59 }
 0x174   :  { %898 = vmatprep.subr.bf16.mxu1 %v1127_v1 }
 0x177   :  { %899 = vmatpush3.bf16.msra.mxu1 %v985_v62 }
 0x178   :  { %900 = vmatprep.subr.bf16.mxu1 %v1127_v1 }
 0x17b   :  { %901 = vmatpush3.bf16.msra.mxu1 %v986_v2 }
 0x1e3   :  { %v715_v4 = vpop.xlane.xlu0 %714 }
 0x1e4   :  { %v723_v5 = vadd.f32 %v809_v3, %v715_v4 }
 0x1e6   :  { %v725_v6 = vand.u32 2147483647, %v723_v5  ;;  %v724_v12 = vmax.f32 %v723_v5, 0.0 }
 0x1e8   :  { %v726_v7 = vsub.f32 0.0, %v725_v6 }
 0x1ea   :  { %v727_v8 = vmul.f32 1.442695, %v726_v7 }
 0x1ec   :  { %997 = vpow2.f32 %v727_v8 }
 0x1f6   :  { %v998_v9 = vpop.eup %997 }
 0x1f7   :  { %v729_v10 = vadd.f32 1.0, %v998_v9 }
 0x1f9   :  { %999 = vlog2.f32 %v729_v10 }
 0x203   :  { %v1000_v11 = vpop.eup %999 }
 0x204   :  { %v731_v13 = vmul.f32 0.6931472, %v1000_v11 }
 0x206   :  { %v732_v14 = vadd.f32 %v731_v13, %v724_v12 }
 0x208   :  { %737 = vperm.xlu0 %938, %v732_v14  }
 0x231   :  { %v362_v24 = vpop.f32.mrb[0].mxu1 }
 0x232   :  { %v363_v25 = vadd.f32 %v772_v22, %v362_v24  ;;  %v864_v26 = vpop.f32.mrb[1].mxu1 }
 0x233   :  { %v365_v27 = vpop.f32.mrb[2].mxu1 }
 0x234   :  { %v480_v28 = vsub.f32 %v475_v23, %v363_v25  ;;  %733 = vst [vmem:[%s1346_s9] sm:$0xff] %v363_v25  ;;  %v865_v29 = vpop.f32.mrb[3].mxu1 }
 0x236   :  { %v481_v30 = vpack.c.bf16 %v480_v28, %v480_v28 }
 0x238   :  { %903 = vmatmul.mubr.bf16.vlgmr.msra.gmra.mrb[4].mxu1 %v481_v30 }
 0x287   :  { %v738_v31 = vpop.permute.xlu0 %737 }
 0x288   :  { %740 = vst [vmem:[%s1348_s11] sm:$0xff] %v738_v31 }
 0x30b   :  { %v587_v35 = vpop.f32.mrb[4].mxu1 }
 0x30c   :  { %v588_v36 = vadd.f32 %v790_v34, %v587_v35  ;;  %v904_v37 = vpop.f32.mrb[5].mxu1 }
 0x30d   :  { %v590_v38 = vpop.f32.mrb[6].mxu1 }
 0x30e   :  { %v593_v39 = vmax.f32 %v588_v36, 0.0  ;;  %v905_v40 = vpop.f32.mrb[7].mxu1 }
 0x310   :  { %v594_v41 = vpack.c.bf16 %v593_v39, %v593_v39 }
 0x312   :  { %923 = vmatmul.mubr.bf16.vlgmr.msra.gmra.mrb[8].mxu0 %v594_v41 }
 0x3e5   :  { %v700_v43 = vpop.f32.mrb[8].mxu0 }
 0x3e6   :  { %v701_v1 = vadd.f32 %v799_v42, %v700_v43  ;;  %v924_v44 = vpop.f32.mrb[9].mxu0 }
 0x3e7   :  { %v703_v45 = vpop.f32.mrb[10].mxu0 }
 0x3e8   :  { %734 = vst [vmem:[%s1347_s10] sm:$0xff] %v701_v1  ;;  %v925_v46 = vpop.f32.mrb[11].mxu0 }
 0x3e9   :  { %753 = vsyncpa [#allocation3], 1 }
 0x3ea   :  { %754 = vsyncpa [#allocation5], 1 }
 0x3eb   :  { %755 = vsyncpa [#allocation8], 1 }

</bundles_post_ra>
